<compile_context>
chip_gen: v5e
topology: v5e:2x2
jax: 0.10.0
libtpu: 0.0.40
codegen_flags: <defaults>
</compile_context>

<pallas_src>
import math

import jax
import jax.numpy as jnp
from jax.experimental import pallas as pl
from jax.experimental.pallas import tpu as pltpu


def _pe_add_kernel(x_ref, pe_ref, o_ref):
    """x_ref: (TS, NB*D), pe_ref: (TS, D). out = x + pe broadcast over batch."""
    pe = pe_ref[...]
    n_copies = x_ref.shape[-1] // pe_ref.shape[-1]  # static (block shapes)
    if n_copies > 1:
        # Replicate PE across the NB folded batch columns (VMEM-local lane
        # concat; cheap — the binding resource here is the HBM DMA stream).
        pe = jnp.concatenate([pe] * n_copies, axis=-1)
    o_ref[...] = x_ref[...] + pe


def make_positional_encoding(d_model, max_len=5000, dtype=jnp.float32):
    """(max_len, 1, d_model) sinusoidal PE buffer — identical to the torch module."""
    position = jnp.arange(0, max_len, dtype=jnp.float32)[:, None]            # (max_len, 1)
    div_term = jnp.exp(
        jnp.arange(0, d_model, 2, dtype=jnp.float32) * (-math.log(10000.0) / d_model)
    )                                                                         # (d_model//2,)
    angles = position * div_term                                              # (max_len, d_model//2)
    # Interleave: pe[:, 0::2] = sin, pe[:, 1::2] = cos (matches torch).
    pe = jnp.stack([jnp.sin(angles), jnp.cos(angles)], axis=-1).reshape(max_len, d_model)
    return pe.astype(dtype)[:, None, :]                                       # (max_len, 1, d_model)


def _choose_tiles(S, B, D, itemsize, block_bytes):
    """Pick (seq_rows, batch_cols) per block so one x block is ~block_bytes.

    ~1 MiB blocks => ~5 MiB peak VMEM (double-buffered x/out/pe + in-kernel
    replicated PE temp): comfortably inside v5e's 16 MiB scoped-VMEM default
    and far from v7x's 64 MiB physical VMEM, while large enough to approach
    the measured ~85%-of-HBM-roofline regime for streaming adds.
    """
    # Lane alignment: a lane block of nb*D columns must be a multiple of 128
    # lanes unless it spans the full folded width (nb == B).
    m = 128 // math.gcd(D, 128)
    row_bytes = D * itemsize
    nb = block_bytes // (8 * row_bytes)          # target >= 8 sublane rows per block
    nb = max(m, (nb // m) * m)
    if nb >= B:
        nb = B                                   # full-dim lane block is always legal
    ts = block_bytes // (nb * row_bytes)
    ts = max(8, (ts // 8) * 8)                   # sublane-aligned row count
    if ts >= S:
        ts = S                                   # full-dim block is always legal
    return ts, nb


def positional_encoding_forward(x, pe_buffer, *, block_bytes=1 << 20, donate_x=False):
    """x: (S, B, D); returns x + pe[:S], with the add done in a tiled Pallas kernel."""
    S, B, D = x.shape
    # Fold batch into the lane axis (metadata-only reshape on a contiguous array).
    x2 = x.reshape(S, B * D)
    # Parameter slicing is glue; keep PE small ((S, D)) and in x's dtype so the
    # kernel streams at most S*D extra bytes. (If x is bf16 the add happens in
    # bf16 — acceptable for a positional encoding.)
    pe2 = pe_buffer[:S, 0, :].astype(x.dtype)

    ts, nb = _choose_tiles(S, B, D, jnp.dtype(x.dtype).itemsize, block_bytes)
    grid = (pl.cdiv(S, ts), pl.cdiv(B, nb))

    out2 = pl.pallas_call(
        _pe_add_kernel,
        out_shape=jax.ShapeDtypeStruct((S, B * D), x.dtype),
        grid_spec=pltpu.PrefetchScalarGridSpec(
            num_scalar_prefetch=0,
            grid=grid,
            in_specs=[
                # x tile: ts seq rows x (nb*D) folded batch/feature lanes (~block_bytes).
                pl.BlockSpec((ts, nb * D), lambda i, j: (i, j)),
                # PE tile depends only on the seq grid axis -> not re-fetched
                # across batch tiles.
                pl.BlockSpec((ts, D), lambda i, j: (i, 0)),
            ],
            out_specs=pl.BlockSpec((ts, nb * D), lambda i, j: (i, j)),
        ),
        compiler_params=pltpu.CompilerParams(
            # Grid iterations are fully independent: lets Mosaic shard them
            # across both TensorCores on v7x (neutral on single-TC v5e/v6e).
            dimension_semantics=("parallel", "parallel"),
        ),
        # Optional: alias x -> out (a pure elementwise add is in-place-able).
        # Off by default so the standalone demo keeps x alive for checking;
        # enable inside a jitted step that donates x to cut allocator pressure.
        input_output_aliases=({0: 0} if donate_x else {}),
    )(x2, pe2)
    return out2.reshape(S, B, D)


def positional_encoding_ref(x, pe_buffer):
    return x + pe_buffer[: x.shape[0]]


if __name__ == "__main__":
    # Small shape consistent with the module: seq=8, batch=2, d_model=32.
    S, B, D = 8, 2, 32
    key = jax.random.PRNGKey(0)
    x = jax.random.normal(key, (S, B, D), dtype=jnp.float32)
    pe_buffer = make_positional_encoding(D, max_len=5000)

    ref = positional_encoding_ref(x, pe_buffer)
    out = jax.block_until_ready(positional_encoding_forward(x, pe_buffer))
    assert out.shape == (S, B, D)
    assert jnp.allclose(out, ref, atol=1e-6, rtol=1e-6), "mismatch vs reference (small)"

    # Second check exercising the real tiled path: multi-step grid, S not a
    # multiple of the row tile (edge block), lane-dense D (multiple of 128).
    S2, B2, D2 = 200, 4, 256
    x_big = jax.random.normal(jax.random.PRNGKey(1), (S2, B2, D2), dtype=jnp.float32)
    pe_big = make_positional_encoding(D2, max_len=5000)
    ref_big = positional_encoding_ref(x_big, pe_big)
    out_big = jax.block_until_ready(
        positional_encoding_forward(x_big, pe_big, block_bytes=1 << 16)
    )
    assert jnp.allclose(out_big, ref_big, atol=1e-6, rtol=1e-6), "mismatch vs reference (tiled)"

    print("KERNEL_OK")
</pallas_src>

<mosaic_0001>
module attributes {stable_mosaic.version = 11 : i64} {
  func.func @_pe_add_kernel(%arg0: i32, %arg1: i32, %arg2: memref<8x64xf32, #tpu.memory_space<vmem>>, %arg3: memref<8x32xf32, #tpu.memory_space<vmem>>, %arg4: memref<8x64xf32, #tpu.memory_space<vmem>>) attributes {dimension_semantics = [#tpu.dimension_semantics<parallel>, #tpu.dimension_semantics<parallel>], iteration_bounds = array<i64: 1, 1>, scalar_prefetch = 0 : i64, scratch_operands = 0 : i64, tpu.core_type = #tpu.core_type<tc>, window_params = [{transform_indices = @transform_0, window_bounds = array<i64: 8, 64>}, {transform_indices = @transform_1, window_bounds = array<i64: 8, 32>}, {transform_indices = @transform_2, window_bounds = array<i64: 8, 64>}]} {
    %c0 = arith.constant 0 : index
    %c0_0 = arith.constant 0 : index
    %0 = vector.load %arg3[%c0, %c0_0] : memref<8x32xf32, #tpu.memory_space<vmem>>, vector<8x32xf32>
    %1 = tpu.concatenate %0, %0 in 1 : vector<8x32xf32>, vector<8x32xf32> -> vector<8x64xf32>
    %c0_1 = arith.constant 0 : index
    %c0_2 = arith.constant 0 : index
    %2 = vector.load %arg2[%c0_1, %c0_2] : memref<8x64xf32, #tpu.memory_space<vmem>>, vector<8x64xf32>
    %3 = arith.addf %2, %1 : vector<8x64xf32>
    %c0_3 = arith.constant 0 : index
    %c0_4 = arith.constant 0 : index
    %4 = vector.load %arg4[%c0_3, %c0_4] : memref<8x64xf32, #tpu.memory_space<vmem>>, vector<8x64xf32>
    tpu.vector_store %arg4[%c0_3, %c0_4], %3 {strides = array<i32>} : memref<8x64xf32, #tpu.memory_space<vmem>>, vector<8x64xf32>,
    return
  }
  func.func @transform_0(%arg0: i32, %arg1: i32) -> (i32, i32) {
    %c0_i32 = arith.constant 0 : i32
    return %arg0, %arg1 : i32, i32
  }
  func.func @transform_1(%arg0: i32, %arg1: i32) -> (i32, i32) {
    %c0_i32 = arith.constant 0 : i32
    %c0_i32_0 = arith.constant 0 : i32
    return %arg0, %c0_i32 : i32, i32
  }
  func.func @transform_2(%arg0: i32, %arg1: i32) -> (i32, i32) {
    %c0_i32 = arith.constant 0 : i32
    return %arg0, %arg1 : i32, i32
  }
}

</mosaic_0001>

<bundles_post_ra>
// kernel: tpu_custom_call.1
= control target key start
LH: loop header
LB: loop body
LE: loop exit
PB: predicated region body
PF: predicated region fallthrough
CT: control target
= control target key end

     0   :  { %7 = vsyncpa [#allocation3], 0  ;;  %s179_s0 = inlined_call_operand.hbm [shape: f32[8,64], index: 0, kind: input, shape index: {}]   ;;  %s180_s1 = inlined_call_operand.hbm [shape: f32[8,32], index: 1, kind: input, shape index: {}]   ;;  %s181_s2 = inlined_call_operand.hbm [shape: f32[8,64], index: 2, kind: output, shape index: {}]  }
   0x1   :  { %8 = vsyncpa [#allocation6], 0 }
   0x2   :  { %9 = vsyncpa [#allocation4], 0  ;;  %s15_s11 = sshll.u32 %s179_s0, 4  ;;  %s151_s12 = smov [#allocation2]   ;;  %s16_s11 = int_to_ptr.hbm [resolvable:$true] %s15_s11 }
   0x3   :  { %s17_s13 = sshll.u32 %s151_s12, 4  ;;  %s26_s16 = sshll.u32 %s180_s1, 4  ;;  %s18_s13 = int_to_ptr.vmem [resolvable:$true] %s17_s13  ;;  %s27_s16 = int_to_ptr.hbm [resolvable:$true] %s26_s16 }
   0x4   :  { %20 = dma.hbm_to_vmem [thread:$0]  %s16_s11, 128, %s18_s13, [#allocation3]  }
   0x5   :  { %s152_s17 = smov [#allocation5]  }
   0x6   :  { %s28_s18 = sshll.u32 %s152_s17, 4  ;;  %s29_s18 = int_to_ptr.vmem [resolvable:$true] %s28_s18 }
   0x7   :  { %31 = dma.hbm_to_vmem [thread:$0]  %s27_s16, 128, %s29_s18, [#allocation6]  }
   0x8   :  { %145 = dma.done.wait [#allocation3], 128  }
   0x9   :  { %146 = vsyncadd [#allocation3], 4294967168 }
   0xa   :  { %147 = dma.done.wait [#allocation6], 128  }
   0xb   :  { %148 = vsyncadd [#allocation6], 4294967168  ;;  %v40_v0 = vld [vmem:[#allocation5] sm:$0xff]  ;;  %s153_s0 = smov 32   ;;  %vm45_vm0 = vcmask 261120   ;;  %v47_v1 = vld [vmem:[#allocation2] sm:$0xff] }
   0xc   :  { %42 = vrot.lane.b32.xlu0 %v40_v0, %s153_s0  ;;  %s154_s19 = smov [#allocation7]   ;;  %s58_s1 = sshll.u32 %s181_s2, 4  ;;  %vm49_vm1 = vcmask 523264   ;;  %s59_s1 = int_to_ptr.hbm [resolvable:$true] %s58_s1 }
   0xd   :  { %s56_s20 = sshll.u32 %s154_s19, 4  ;;  %s57_s20 = int_to_ptr.vmem [resolvable:$true] %s56_s20 }
  0x7e   :  { %v43_v2 = vpop.permute.xlu0 %42 }
  0x7f   :  { %v46_v3 = vsel %vm45_vm0, %v40_v0, %v43_v2 }
  0x80   :  { %v48_v4 = vadd.f32 %v47_v1, %v46_v3 }
  0x82   :  { %50 = vst.msk [vmem:[#allocation7] sm:$0xff] %vm49_vm1, %v48_v4 }
  0x83   :  { %61 = dma.vmem_to_hbm [thread:$0]  %s57_s20, 128, %s59_s1, [#allocation4]  }
  0x84   :  { %149 = dma.done.wait [#allocation4], 128  }
  0x85   :  { %150 = vsyncadd [#allocation4], 4294967168 }
  0x86   :  { %66 = vsyncpa [#allocation3], 1 }
  0x87   :  { %67 = vsyncpa [#allocation6], 1 }
  0x88   :  { %68 = vsyncpa [#allocation4], 1 }

</bundles_post_ra>
